<compile_context>
chip_gen: v6e
topology: v6e:2x2x1
jax: 0.10.0
libtpu: 0.0.40
codegen_flags: <defaults>
</compile_context>

<pallas_src>
from functools import partial

import numpy as np
import jax
import jax.numpy as jnp
from jax.experimental import pallas as pl
from jax.experimental.pallas import tpu as pltpu

_LANE = 128


def _cdiv(a, b):
    return -(-a // b)


def _round_up(x, m):
    return ((x + m - 1) // m) * m


def _pick_row_block(h, target=256):
    """Largest multiple-of-8 divisor of h that is <= target (h itself if h % 8 != 0)."""
    if h % 8 != 0:
        return h
    best = 8
    d = 8
    while d <= min(h, target):
        if h % d == 0:
            best = d
        d += 8
    return best


def _total_loss_kernel(lambdas, counts, chunk_counts,
                       enc_ref, fx_ref, fy_ref,
                       axy_ref, ayx_ref, bxy_ref, byx_ref, label_ref,
                       dec_ref, img_ref,
                       out_ref,
                       rec_acc, four_acc, dec_acc):
    lam_rec, lam_fourier, lam_dec = lambdas
    n_enc_elems, n_coef_elems, n_img_elems = counts
    n_enc_chunks, n_img_chunks = chunk_counts

    b = pl.program_id(0)
    j = pl.program_id(1)
    is_first = (b == 0) & (j == 0)
    is_last = (b == pl.num_programs(0) - 1) & (j == pl.num_programs(1) - 1)

    # ---- init accumulators on the very first grid step ----
    @pl.when(is_first)
    def _init():
        rec_acc[...] = jnp.zeros_like(rec_acc)
        four_acc[...] = jnp.zeros_like(four_acc)
        dec_acc[...] = jnp.zeros_like(dec_acc)

    # ---- decoder-image MSE partial (lane-dense (1, TR, 128) tiles) ----
    @pl.when(j < n_img_chunks)
    def _dec():
        g = dec_ref[...].astype(jnp.float32) - img_ref[...].astype(jnp.float32)
        dec_acc[...] += jnp.sum(g * g, axis=1)          # (1, 128): sublane reduce only

    # ---- encoded-image reconstruction MSE partial (recon never materialized) ----
    @pl.when(j < n_enc_chunks)
    def _rec():
        e = enc_ref[...].astype(jnp.float32)            # (1, TH, W)
        fy = fy_ref[...].astype(jnp.float32)            # (1, TH, 1)  lane-broadcast
        fx = fx_ref[...].astype(jnp.float32)            # (1, 1, W)   sublane-broadcast
        r = e - fy - fx
        rec_acc[...] += jnp.sum(r * r, axis=1)          # (1, W)

    # ---- Fourier-coefficient MSE partial (once per batch element) ----
    @pl.when(j == 0)
    def _four():
        lab = label_ref[...].astype(jnp.float32)        # (1, 4, N)
        e0 = axy_ref[:, 0, :].astype(jnp.float32) - lab[:, 0, :]
        e1 = ayx_ref[:, 0, :].astype(jnp.float32) - lab[:, 1, :]
        e2 = bxy_ref[:, 0, :].astype(jnp.float32) - lab[:, 2, :]
        e3 = byx_ref[:, 0, :].astype(jnp.float32) - lab[:, 3, :]
        four_acc[...] += e0 * e0 + e1 * e1 + e2 * e2 + e3 * e3   # (1, N)

    # ---- finalize: single cross-lane collapse + scalar SMEM writes ----
    @pl.when(is_last)
    def _finalize():
        rec_loss = jnp.sum(rec_acc[...]) / n_enc_elems
        fourier_loss = jnp.sum(four_acc[...]) / n_coef_elems
        dec_loss = jnp.sum(dec_acc[...]) / n_img_elems
        total = (lam_rec * rec_loss + lam_fourier * fourier_loss
                 + lam_dec * dec_loss)
        out_ref[0, 0] = total
        out_ref[0, 1] = rec_loss
        out_ref[0, 2] = fourier_loss
        out_ref[0, 3] = dec_loss


def total_loss_forward(encoded_image, fourier_coefficients, label,
                       decoded_image, img,
                       lambda_reconstruction=0.0,
                       lambda_fourier=1.0,
                       lambda_decoder=1.0,
                       *,
                       img_tile_rows=2048,   # 2048 rows x 128 lanes x 4B = 1 MiB / operand tile
                       enc_tile_rows=256):
    """Returns (total, reconstruction_loss, fourier_loss, decoded_image_loss)."""
    B, H, W = encoded_image.shape
    axy = fourier_coefficients['Axy']
    ayx = fourier_coefficients['Ayx']
    bxy = fourier_coefficients['Bxy']
    byx = fourier_coefficients['Byx']
    N = axy.shape[-1]
    assert decoded_image.shape == img.shape and decoded_image.shape[0] == B
    assert label.shape == (B, 4, N)

    f32 = jnp.float32

    # ---- tiny Fourier-basis row/column profiles (hoisted out of the hot loop;
    #      torch detaches the coefficients -> forward values identical) ----
    n = jnp.arange(1, N + 1, dtype=f32)[:, None]            # [N, 1]
    wpos = jnp.arange(W, dtype=f32)[None, :]                # [1, W]
    hpos = jnp.arange(H, dtype=f32)[None, :]                # [1, H]
    cos_x = jnp.cos(2.0 * np.pi * n * wpos / W)             # [N, W]
    sin_x = jnp.sin(2.0 * np.pi * n * wpos / W)
    cos_y = jnp.cos(2.0 * np.pi * n * hpos / H)             # [N, H]
    sin_y = jnp.sin(2.0 * np.pi * n * hpos / H)
    fx = (axy.astype(f32) @ cos_x + bxy.astype(f32) @ sin_x)[:, None, :]   # [B, 1, W]
    fy = (ayx.astype(f32) @ cos_y + byx.astype(f32) @ sin_y)[:, :, None]   # [B, H, 1]

    # ---- lane-dense flattening of the big MSE operands (native dtype; the
    #      zero padding contributes exactly 0 to the squared diff) ----
    P = int(np.prod(decoded_image.shape[1:]))
    rows = _cdiv(P, _LANE)
    tr = min(_round_up(img_tile_rows, 8), _round_up(rows, 8))
    n_img_chunks = _cdiv(rows, tr)
    rows_pad = n_img_chunks * tr
    pad = rows_pad * _LANE - P

    def _flat(x):
        x2 = x.reshape(B, P)
        if pad:
            x2 = jnp.pad(x2, ((0, 0), (0, pad)))
        return x2.reshape(B, rows_pad, _LANE)

    dec3 = _flat(decoded_image)
    img3 = _flat(img)

    # ---- encoded-image tiling along H (TH divides H, multiple of 8 or full) ----
    th = _pick_row_block(H, target=enc_tile_rows)
    n_enc_chunks = H // th

    n_chunks = max(n_img_chunks, n_enc_chunks)

    def _chunk_map(chunks):
        if chunks == n_chunks:
            return lambda b, j: (b, j, 0)
        # clamp: once this operand is exhausted its block index stops changing
        # (no extra DMA); its contribution is guarded by pl.when in the kernel.
        return lambda b, j: (b, jnp.minimum(j, chunks - 1), 0)

    enc_map = _chunk_map(n_enc_chunks)
    img_map = _chunk_map(n_img_chunks)
    per_b = lambda b, j: (b, 0, 0)

    def coef3(c):
        return c.reshape(B, 1, N)

    kernel = partial(
        _total_loss_kernel,
        (float(lambda_reconstruction), float(lambda_fourier), float(lambda_decoder)),
        (float(B * H * W), float(B * 4 * N), float(np.prod(img.shape))),
        (n_enc_chunks, n_img_chunks))

    out = pl.pallas_call(
        kernel,
        out_shape=jax.ShapeDtypeStruct((1, 4), jnp.float32),
        grid_spec=pltpu.PrefetchScalarGridSpec(
            num_scalar_prefetch=0,
            grid=(B, n_chunks),
            in_specs=[
                pl.BlockSpec((1, th, W), enc_map),        # encoded_image
                pl.BlockSpec((1, 1, W), per_b),           # fx row profile
                pl.BlockSpec((1, th, 1), enc_map),        # fy column profile
                pl.BlockSpec((1, 1, N), per_b),           # Axy
                pl.BlockSpec((1, 1, N), per_b),           # Ayx
                pl.BlockSpec((1, 1, N), per_b),           # Bxy
                pl.BlockSpec((1, 1, N), per_b),           # Byx
                pl.BlockSpec((1, 4, N), per_b),           # label
                pl.BlockSpec((1, tr, _LANE), img_map),    # decoded_image (flattened)
                pl.BlockSpec((1, tr, _LANE), img_map),    # img (flattened)
            ],
            out_specs=pl.BlockSpec((1, 4), lambda b, j: (0, 0),
                                   memory_space=pltpu.MemorySpace.SMEM),
            scratch_shapes=[
                pltpu.VMEM((1, W), jnp.float32),          # reconstruction partials
                pltpu.VMEM((1, N), jnp.float32),          # fourier partials
                pltpu.VMEM((1, _LANE), jnp.float32),      # decoder partials
            ]),
        compiler_params=pltpu.CompilerParams(
            # Accumulators are shared across the whole grid, so both axes are a
            # sequential reduction.  TODO(synk): emit per-batch partial sums so
            # the batch axis can run "parallel" across v7x's two TensorCores.
            dimension_semantics=("arbitrary", "arbitrary"),
            vmem_limit_bytes=32 * 1024 * 1024),
    )(encoded_image, fx, fy,
      coef3(axy), coef3(ayx), coef3(bxy), coef3(byx), label,
      dec3, img3)

    return out[0, 0], out[0, 1], out[0, 2], out[0, 3]


if __name__ == "__main__":
    # Small deterministic shapes consistent with the forward pass.
    B, H, W = 2, 16, 16      # encoded_image [B, H, W]
    C = 4                    # decoded_image / img [B, C, H, W] (NCHW)
    N = 8                    # number of Fourier harmonics per coefficient

    key = jax.random.PRNGKey(0)
    k = jax.random.split(key, 8)
    encoded_image = jax.random.normal(k[0], (B, H, W), jnp.float32)
    fourier_coefficients = {
        'Axy': jax.random.normal(k[1], (B, N), jnp.float32),
        'Ayx': jax.random.normal(k[2], (B, N), jnp.float32),
        'Bxy': jax.random.normal(k[3], (B, N), jnp.float32),
        'Byx': jax.random.normal(k[4], (B, N), jnp.float32),
    }
    label = jax.random.normal(k[5], (B, 4, N), jnp.float32)
    decoded_image = jax.random.normal(k[6], (B, C, H, W), jnp.float32)
    img = jax.random.normal(k[7], (B, C, H, W), jnp.float32)

    total, rec_l, four_l, dec_l = total_loss_forward(
        encoded_image, fourier_coefficients, label, decoded_image, img,
        lambda_reconstruction=0.0, lambda_fourier=1.0, lambda_decoder=1.0)
    jax.block_until_ready((total, rec_l, four_l, dec_l))

    # Pure-JAX reference check (same math, no Pallas).
    n = jnp.arange(1, N + 1, dtype=jnp.float32)[:, None]
    cos_x = jnp.cos(2 * np.pi * n * jnp.arange(W, dtype=jnp.float32)[None, :] / W)
    sin_x = jnp.sin(2 * np.pi * n * jnp.arange(W, dtype=jnp.float32)[None, :] / W)
    cos_y = jnp.cos(2 * np.pi * n * jnp.arange(H, dtype=jnp.float32)[None, :] / H)
    sin_y = jnp.sin(2 * np.pi * n * jnp.arange(H, dtype=jnp.float32)[None, :] / H)
    fx = fourier_coefficients['Axy'] @ cos_x + fourier_coefficients['Bxy'] @ sin_x
    fy = fourier_coefficients['Ayx'] @ cos_y + fourier_coefficients['Byx'] @ sin_y
    recon = fy[:, :, None] + fx[:, None, :]
    rec_ref = jnp.mean((encoded_image - recon) ** 2)
    coeffs = jnp.stack([fourier_coefficients['Axy'], fourier_coefficients['Ayx'],
                        fourier_coefficients['Bxy'], fourier_coefficients['Byx']], axis=1)
    four_ref = jnp.mean((coeffs - label) ** 2)
    dec_ref = jnp.mean((decoded_image - img) ** 2)
    total_ref = 0.0 * rec_ref + 1.0 * four_ref + 1.0 * dec_ref

    np.testing.assert_allclose(np.asarray(total), np.asarray(total_ref), rtol=1e-5, atol=1e-5)
    np.testing.assert_allclose(np.asarray(rec_l), np.asarray(rec_ref), rtol=1e-5, atol=1e-5)
    np.testing.assert_allclose(np.asarray(four_l), np.asarray(four_ref), rtol=1e-5, atol=1e-5)
    np.testing.assert_allclose(np.asarray(dec_l), np.asarray(dec_ref), rtol=1e-5, atol=1e-5)

    print("KERNEL_OK")
</pallas_src>

<mosaic_0001>
module attributes {stable_mosaic.version = 11 : i64} {
  func.func @_total_loss_kernel(%arg0: i32, %arg1: i32, %arg2: memref<1x16x16xf32, #tpu.memory_space<vmem>>, %arg3: memref<1x1x16xf32, #tpu.memory_space<vmem>>, %arg4: memref<1x16x1xf32, #tpu.memory_space<vmem>>, %arg5: memref<1x1x8xf32, #tpu.memory_space<vmem>>, %arg6: memref<1x1x8xf32, #tpu.memory_space<vmem>>, %arg7: memref<1x1x8xf32, #tpu.memory_space<vmem>>, %arg8: memref<1x1x8xf32, #tpu.memory_space<vmem>>, %arg9: memref<1x4x8xf32, #tpu.memory_space<vmem>>, %arg10: memref<1x8x128xf32, #tpu.memory_space<vmem>>, %arg11: memref<1x8x128xf32, #tpu.memory_space<vmem>>, %arg12: memref<1x4xf32, #tpu.memory_space<smem>>, %arg13: memref<1x16xf32, #tpu.memory_space<vmem>>, %arg14: memref<1x8xf32, #tpu.memory_space<vmem>>, %arg15: memref<1x128xf32, #tpu.memory_space<vmem>>) attributes {dimension_semantics = [#tpu.dimension_semantics<arbitrary>, #tpu.dimension_semantics<arbitrary>], iteration_bounds = array<i64: 2, 1>, scalar_prefetch = 0 : i64, scratch_operands = 3 : i64, tpu.core_type = #tpu.core_type<tc>, window_params = [{transform_indices = @transform_0, window_bounds = array<i64: 1, 16, 16>}, {transform_indices = @transform_1, window_bounds = array<i64: 1, 1, 16>}, {transform_indices = @transform_2, window_bounds = array<i64: 1, 16, 1>}, {transform_indices = @transform_3, window_bounds = array<i64: 1, 1, 8>}, {transform_indices = @transform_4, window_bounds = array<i64: 1, 1, 8>}, {transform_indices = @transform_5, window_bounds = array<i64: 1, 1, 8>}, {transform_indices = @transform_6, window_bounds = array<i64: 1, 1, 8>}, {transform_indices = @transform_7, window_bounds = array<i64: 1, 4, 8>}, {transform_indices = @transform_8, window_bounds = array<i64: 1, 8, 128>}, {transform_indices = @transform_9, window_bounds = array<i64: 1, 8, 128>}, {transform_indices = @transform_10, window_bounds = array<i64: 1, 4>}]} {
    %c0_i32 = arith.constant 0 : i32
    %0 = arith.cmpi eq, %arg0, %c0_i32 : i32
    %c0_i32_0 = arith.constant 0 : i32
    %1 = arith.cmpi eq, %arg1, %c0_i32_0 : i32
    %2 = arith.andi %0, %1 : i1
    %c1_i32 = arith.constant 1 : i32
    %3 = arith.cmpi eq, %arg0, %c1_i32 : i32
    %c0_i32_1 = arith.constant 0 : i32
    %4 = arith.cmpi eq, %arg1, %c0_i32_1 : i32
    %5 = arith.andi %3, %4 : i1
    %6 = arith.extui %2 : i1 to i32
    %c0_i32_2 = arith.constant 0 : i32
    %7 = arith.cmpi ne, %6, %c0_i32_2 : i32
    scf.if %7 {
      %cst = arith.constant 0.000000e+00 : f32
      %19 = vector.broadcast %cst : f32 to vector<1x16xf32>
      %c0 = arith.constant 0 : index
      %c0_10 = arith.constant 0 : index
      %20 = vector.load %arg13[%c0, %c0_10] : memref<1x16xf32, #tpu.memory_space<vmem>>, vector<1x16xf32>
      tpu.vector_store %arg13[%c0, %c0_10], %19 {strides = array<i32>} : memref<1x16xf32, #tpu.memory_space<vmem>>, vector<1x16xf32>,
      %cst_11 = arith.constant 0.000000e+00 : f32
      %21 = vector.broadcast %cst_11 : f32 to vector<1x8xf32>
      %c0_12 = arith.constant 0 : index
      %c0_13 = arith.constant 0 : index
      %22 = vector.load %arg14[%c0_12, %c0_13] : memref<1x8xf32, #tpu.memory_space<vmem>>, vector<1x8xf32>
      tpu.vector_store %arg14[%c0_12, %c0_13], %21 {strides = array<i32>} : memref<1x8xf32, #tpu.memory_space<vmem>>, vector<1x8xf32>,
      %cst_14 = arith.constant 0.000000e+00 : f32
      %23 = vector.broadcast %cst_14 : f32 to vector<1x128xf32>
      %c0_15 = arith.constant 0 : index
      %c0_16 = arith.constant 0 : index
      %24 = vector.load %arg15[%c0_15, %c0_16] : memref<1x128xf32, #tpu.memory_space<vmem>>, vector<1x128xf32>
      tpu.vector_store %arg15[%c0_15, %c0_16], %23 {strides = array<i32>} : memref<1x128xf32, #tpu.memory_space<vmem>>, vector<1x128xf32>,
    } else {
    }
    %c1_i32_3 = arith.constant 1 : i32
    %8 = arith.cmpi slt, %arg1, %c1_i32_3 : i32
    %9 = arith.extui %8 : i1 to i32
    %c0_i32_4 = arith.constant 0 : i32
    %10 = arith.cmpi ne, %9, %c0_i32_4 : i32
    scf.if %10 {
      %c0 = arith.constant 0 : index
      %c0_10 = arith.constant 0 : index
      %c0_11 = arith.constant 0 : index
      %19 = vector.load %arg10[%c0, %c0_10, %c0_11] : memref<1x8x128xf32, #tpu.memory_space<vmem>>, vector<1x8x128xf32>
      %c0_12 = arith.constant 0 : index
      %c0_13 = arith.constant 0 : index
      %c0_14 = arith.constant 0 : index
      %20 = vector.load %arg11[%c0_12, %c0_13, %c0_14] : memref<1x8x128xf32, #tpu.memory_space<vmem>>, vector<1x8x128xf32>
      %21 = arith.subf %19, %20 : vector<1x8x128xf32>
      %c0_15 = arith.constant 0 : index
      %c0_16 = arith.constant 0 : index
      %22 = vector.load %arg15[%c0_15, %c0_16] : memref<1x128xf32, #tpu.memory_space<vmem>>, vector<1x128xf32>
      %23 = arith.mulf %21, %21 : vector<1x8x128xf32>
      %cst = arith.constant dense<0.000000e+00> : vector<1x128xf32>
      %24 = vector.multi_reduction <add>, %23, %cst [1] : vector<1x8x128xf32> to vector<1x128xf32>
      %25 = arith.addf %22, %24 : vector<1x128xf32>
      %c0_17 = arith.constant 0 : index
      %c0_18 = arith.constant 0 : index
      %26 = vector.load %arg15[%c0_17, %c0_18] : memref<1x128xf32, #tpu.memory_space<vmem>>, vector<1x128xf32>
      tpu.vector_store %arg15[%c0_17, %c0_18], %25 {strides = array<i32>} : memref<1x128xf32, #tpu.memory_space<vmem>>, vector<1x128xf32>,
    } else {
    }
    %c1_i32_5 = arith.constant 1 : i32
    %11 = arith.cmpi slt, %arg1, %c1_i32_5 : i32
    %12 = arith.extui %11 : i1 to i32
    %c0_i32_6 = arith.constant 0 : i32
    %13 = arith.cmpi ne, %12, %c0_i32_6 : i32
    scf.if %13 {
      %c0 = arith.constant 0 : index
      %c0_10 = arith.constant 0 : index
      %c0_11 = arith.constant 0 : index
      %19 = vector.load %arg2[%c0, %c0_10, %c0_11] : memref<1x16x16xf32, #tpu.memory_space<vmem>>, vector<1x16x16xf32>
      %c0_12 = arith.constant 0 : index
      %c0_13 = arith.constant 0 : index
      %c0_14 = arith.constant 0 : index
      %20 = vector.load %arg4[%c0_12, %c0_13, %c0_14] : memref<1x16x1xf32, #tpu.memory_space<vmem>>, vector<1x16x1xf32>
      %c0_15 = arith.constant 0 : index
      %c0_16 = arith.constant 0 : index
      %c0_17 = arith.constant 0 : index
      %21 = vector.load %arg3[%c0_15, %c0_16, %c0_17] : memref<1x1x16xf32, #tpu.memory_space<vmem>>, vector<1x1x16xf32>
      %22 = vector.broadcast %20 : vector<1x16x1xf32> to vector<1x16x16xf32>
      %23 = arith.subf %19, %22 : vector<1x16x16xf32>
      %24 = vector.broadcast %21 : vector<1x1x16xf32> to vector<1x16x16xf32>
      %25 = arith.subf %23, %24 : vector<1x16x16xf32>
      %c0_18 = arith.constant 0 : index
      %c0_19 = arith.constant 0 : index
      %26 = vector.load %arg13[%c0_18, %c0_19] : memref<1x16xf32, #tpu.memory_space<vmem>>, vector<1x16xf32>
      %27 = arith.mulf %25, %25 : vector<1x16x16xf32>
      %cst = arith.constant dense<0.000000e+00> : vector<1x16xf32>
      %28 = vector.multi_reduction <add>, %27, %cst [1] : vector<1x16x16xf32> to vector<1x16xf32>
      %29 = arith.addf %26, %28 : vector<1x16xf32>
      %c0_20 = arith.constant 0 : index
      %c0_21 = arith.constant 0 : index
      %30 = vector.load %arg13[%c0_20, %c0_21] : memref<1x16xf32, #tpu.memory_space<vmem>>, vector<1x16xf32>
      tpu.vector_store %arg13[%c0_20, %c0_21], %29 {strides = array<i32>} : memref<1x16xf32, #tpu.memory_space<vmem>>, vector<1x16xf32>,
    } else {
    }
    %c0_i32_7 = arith.constant 0 : i32
    %14 = arith.cmpi eq, %arg1, %c0_i32_7 : i32
    %15 = arith.extui %14 : i1 to i32
    %c0_i32_8 = arith.constant 0 : i32
    %16 = arith.cmpi ne, %15, %c0_i32_8 : i32
    scf.if %16 {
      %c0 = arith.constant 0 : index
      %c0_10 = arith.constant 0 : index
      %c0_11 = arith.constant 0 : index
      %19 = vector.load %arg9[%c0, %c0_10, %c0_11] : memref<1x4x8xf32, #tpu.memory_space<vmem>>, vector<1x4x8xf32>
      %c0_12 = arith.constant 0 : index
      %c0_13 = arith.constant 0 : index
      %c0_14 = arith.constant 0 : index
      %20 = vector.load %arg5[%c0_12, %c0_13, %c0_14] : memref<1x1x8xf32, #tpu.memory_space<vmem>>, vector<1x1x8xf32>
      %21 = vector.shape_cast %20 : vector<1x1x8xf32> to vector<1x8xf32>
      %22 = vector.extract_strided_slice %19 {offsets = [0, 0, 0], sizes = [1, 1, 8], strides = [1, 1, 1]} : vector<1x4x8xf32> to vector<1x1x8xf32>
      %23 = vector.shape_cast %22 : vector<1x1x8xf32> to vector<1x8xf32>
      %24 = arith.subf %21, %23 : vector<1x8xf32>
      %c0_15 = arith.constant 0 : index
      %c0_16 = arith.constant 0 : index
      %c0_17 = arith.constant 0 : index
      %25 = vector.load %arg6[%c0_15, %c0_16, %c0_17] : memref<1x1x8xf32, #tpu.memory_space<vmem>>, vector<1x1x8xf32>
      %26 = vector.shape_cast %25 : vector<1x1x8xf32> to vector<1x8xf32>
      %27 = vector.extract_strided_slice %19 {offsets = [0, 1, 0], sizes = [1, 1, 8], strides = [1, 1, 1]} : vector<1x4x8xf32> to vector<1x1x8xf32>
      %28 = vector.shape_cast %27 : vector<1x1x8xf32> to vector<1x8xf32>
      %29 = arith.subf %26, %28 : vector<1x8xf32>
      %c0_18 = arith.constant 0 : index
      %c0_19 = arith.constant 0 : index
      %c0_20 = arith.constant 0 : index
      %30 = vector.load %arg7[%c0_18, %c0_19, %c0_20] : memref<1x1x8xf32, #tpu.memory_space<vmem>>, vector<1x1x8xf32>
      %31 = vector.shape_cast %30 : vector<1x1x8xf32> to vector<1x8xf32>
      %32 = vector.extract_strided_slice %19 {offsets = [0, 2, 0], sizes = [1, 1, 8], strides = [1, 1, 1]} : vector<1x4x8xf32> to vector<1x1x8xf32>
      %33 = vector.shape_cast %32 : vector<1x1x8xf32> to vector<1x8xf32>
      %34 = arith.subf %31, %33 : vector<1x8xf32>
      %c0_21 = arith.constant 0 : index
      %c0_22 = arith.constant 0 : index
      %c0_23 = arith.constant 0 : index
      %35 = vector.load %arg8[%c0_21, %c0_22, %c0_23] : memref<1x1x8xf32, #tpu.memory_space<vmem>>, vector<1x1x8xf32>
      %36 = vector.shape_cast %35 : vector<1x1x8xf32> to vector<1x8xf32>
      %37 = vector.extract_strided_slice %19 {offsets = [0, 3, 0], sizes = [1, 1, 8], strides = [1, 1, 1]} : vector<1x4x8xf32> to vector<1x1x8xf32>
      %38 = vector.shape_cast %37 : vector<1x1x8xf32> to vector<1x8xf32>
      %39 = arith.subf %36, %38 : vector<1x8xf32>
      %c0_24 = arith.constant 0 : index
      %c0_25 = arith.constant 0 : index
      %40 = vector.load %arg14[%c0_24, %c0_25] : memref<1x8xf32, #tpu.memory_space<vmem>>, vector<1x8xf32>
      %41 = arith.mulf %24, %24 : vector<1x8xf32>
      %42 = arith.mulf %29, %29 : vector<1x8xf32>
      %43 = arith.addf %41, %42 : vector<1x8xf32>
      %44 = arith.mulf %34, %34 : vector<1x8xf32>
      %45 = arith.addf %43, %44 : vector<1x8xf32>
      %46 = arith.mulf %39, %39 : vector<1x8xf32>
      %47 = arith.addf %45, %46 : vector<1x8xf32>
      %48 = arith.addf %40, %47 : vector<1x8xf32>
      %c0_26 = arith.constant 0 : index
      %c0_27 = arith.constant 0 : index
      %49 = vector.load %arg14[%c0_26, %c0_27] : memref<1x8xf32, #tpu.memory_space<vmem>>, vector<1x8xf32>
      tpu.vector_store %arg14[%c0_26, %c0_27], %48 {strides = array<i32>} : memref<1x8xf32, #tpu.memory_space<vmem>>, vector<1x8xf32>,
    } else {
    }
    %17 = arith.extui %5 : i1 to i32
    %c0_i32_9 = arith.constant 0 : i32
    %18 = arith.cmpi ne, %17, %c0_i32_9 : i32
    scf.if %18 {
      %c0 = arith.constant 0 : index
      %c0_10 = arith.constant 0 : index
      %19 = vector.load %arg13[%c0, %c0_10] : memref<1x16xf32, #tpu.memory_space<vmem>>, vector<1x16xf32>
      %20 = vector.shape_cast %19 : vector<1x16xf32> to vector<1x1x16xf32>
      %cst = arith.constant dense<0.000000e+00> : vector<1xf32>
      %21 = vector.multi_reduction <add>, %20, %cst [1, 2] : vector<1x1x16xf32> to vector<1xf32>
      %22 = vector.shape_cast %21 : vector<1xf32> to vector<1x1x1xf32>
      %23 = vector.extract %22[0, 0, 0] : f32 from vector<1x1x1xf32>
      %cst_11 = arith.constant 5.120000e+02 : f32
      %24 = arith.divf %23, %cst_11 : f32
      %c0_12 = arith.constant 0 : index
      %c0_13 = arith.constant 0 : index
      %25 = vector.load %arg14[%c0_12, %c0_13] : memref<1x8xf32, #tpu.memory_space<vmem>>, vector<1x8xf32>
      %26 = vector.shape_cast %25 : vector<1x8xf32> to vector<1x1x8xf32>
      %cst_14 = arith.constant dense<0.000000e+00> : vector<1xf32>
      %27 = vector.multi_reduction <add>, %26, %cst_14 [1, 2] : vector<1x1x8xf32> to vector<1xf32>
      %28 = vector.shape_cast %27 : vector<1xf32> to vector<1x1x1xf32>
      %29 = vector.extract %28[0, 0, 0] : f32 from vector<1x1x1xf32>
      %cst_15 = arith.constant 6.400000e+01 : f32
      %30 = arith.divf %29, %cst_15 : f32
      %c0_16 = arith.constant 0 : index
      %c0_17 = arith.constant 0 : index
      %31 = vector.load %arg15[%c0_16, %c0_17] : memref<1x128xf32, #tpu.memory_space<vmem>>, vector<1x128xf32>
      %32 = vector.shape_cast %31 : vector<1x128xf32> to vector<1x1x128xf32>
      %cst_18 = arith.constant dense<0.000000e+00> : vector<1xf32>
      %33 = vector.multi_reduction <add>, %32, %cst_18 [1, 2] : vector<1x1x128xf32> to vector<1xf32>
      %34 = vector.shape_cast %33 : vector<1xf32> to vector<1x1x1xf32>
      %35 = vector.extract %34[0, 0, 0] : f32 from vector<1x1x1xf32>
      %cst_19 = arith.constant 2.048000e+03 : f32
      %36 = arith.divf %35, %cst_19 : f32
      %cst_20 = arith.constant 0.000000e+00 : f32
      %37 = arith.mulf %cst_20, %24 : f32
      %cst_21 = arith.constant 1.000000e+00 : f32
      %38 = arith.mulf %cst_21, %30 : f32
      %39 = arith.addf %37, %38 : f32
      %cst_22 = arith.constant 1.000000e+00 : f32
      %40 = arith.mulf %cst_22, %36 : f32
      %41 = arith.addf %39, %40 : f32
      %c0_23 = arith.constant 0 : index
      %c0_24 = arith.constant 0 : index
      %42 = memref.load %arg12[%c0_23, %c0_24] : memref<1x4xf32, #tpu.memory_space<smem>>
      memref.store %41, %arg12[%c0_23, %c0_24] : memref<1x4xf32, #tpu.memory_space<smem>>
      %c0_25 = arith.constant 0 : index
      %c1 = arith.constant 1 : index
      %43 = memref.load %arg12[%c0_25, %c1] : memref<1x4xf32, #tpu.memory_space<smem>>
      memref.store %24, %arg12[%c0_25, %c1] : memref<1x4xf32, #tpu.memory_space<smem>>
      %c0_26 = arith.constant 0 : index
      %c2 = arith.constant 2 : index
      %44 = memref.load %arg12[%c0_26, %c2] : memref<1x4xf32, #tpu.memory_space<smem>>
      memref.store %30, %arg12[%c0_26, %c2] : memref<1x4xf32, #tpu.memory_space<smem>>
      %c0_27 = arith.constant 0 : index
      %c3 = arith.constant 3 : index
      %45 = memref.load %arg12[%c0_27, %c3] : memref<1x4xf32, #tpu.memory_space<smem>>
      memref.store %36, %arg12[%c0_27, %c3] : memref<1x4xf32, #tpu.memory_space<smem>>
    } else {
    }
    return
  }
  func.func @transform_0(%arg0: i32, %arg1: i32) -> (i32, i32, i32) {
    %c0_i32 = arith.constant 0 : i32
    %c0_i32_0 = arith.constant 0 : i32
    return %arg0, %arg1, %c0_i32 : i32, i32, i32
  }
  func.func @transform_1(%arg0: i32, %arg1: i32) -> (i32, i32, i32) {
    %c0_i32 = arith.constant 0 : i32
    %c0_i32_0 = arith.constant 0 : i32
    %c0_i32_1 = arith.constant 0 : i32
    return %arg0, %c0_i32, %c0_i32_0 : i32, i32, i32
  }
  func.func @transform_2(%arg0: i32, %arg1: i32) -> (i32, i32, i32) {
    %c0_i32 = arith.constant 0 : i32
    %c0_i32_0 = arith.constant 0 : i32
    return %arg0, %arg1, %c0_i32 : i32, i32, i32
  }
  func.func @transform_3(%arg0: i32, %arg1: i32) -> (i32, i32, i32) {
    %c0_i32 = arith.constant 0 : i32
    %c0_i32_0 = arith.constant 0 : i32
    %c0_i32_1 = arith.constant 0 : i32
    return %arg0, %c0_i32, %c0_i32_0 : i32, i32, i32
  }
  func.func @transform_4(%arg0: i32, %arg1: i32) -> (i32, i32, i32) {
    %c0_i32 = arith.constant 0 : i32
    %c0_i32_0 = arith.constant 0 : i32
    %c0_i32_1 = arith.constant 0 : i32
    return %arg0, %c0_i32, %c0_i32_0 : i32, i32, i32
  }
  func.func @transform_5(%arg0: i32, %arg1: i32) -> (i32, i32, i32) {
    %c0_i32 = arith.constant 0 : i32
    %c0_i32_0 = arith.constant 0 : i32
    %c0_i32_1 = arith.constant 0 : i32
    return %arg0, %c0_i32, %c0_i32_0 : i32, i32, i32
  }
  func.func @transform_6(%arg0: i32, %arg1: i32) -> (i32, i32, i32) {
    %c0_i32 = arith.constant 0 : i32
    %c0_i32_0 = arith.constant 0 : i32
    %c0_i32_1 = arith.constant 0 : i32
    return %arg0, %c0_i32, %c0_i32_0 : i32, i32, i32
  }
  func.func @transform_7(%arg0: i32, %arg1: i32) -> (i32, i32, i32) {
    %c0_i32 = arith.constant 0 : i32
    %c0_i32_0 = arith.constant 0 : i32
    %c0_i32_1 = arith.constant 0 : i32
    return %arg0, %c0_i32, %c0_i32_0 : i32, i32, i32
  }
  func.func @transform_8(%arg0: i32, %arg1: i32) -> (i32, i32, i32) {
    %c0_i32 = arith.constant 0 : i32
    %c0_i32_0 = arith.constant 0 : i32
    return %arg0, %arg1, %c0_i32 : i32, i32, i32
  }
  func.func @transform_9(%arg0: i32, %arg1: i32) -> (i32, i32, i32) {
    %c0_i32 = arith.constant 0 : i32
    %c0_i32_0 = arith.constant 0 : i32
    return %arg0, %arg1, %c0_i32 : i32, i32, i32
  }
  func.func @transform_10(%arg0: i32, %arg1: i32) -> (i32, i32) {
    %c0_i32 = arith.constant 0 : i32
    %c0_i32_0 = arith.constant 0 : i32
    %c0_i32_1 = arith.constant 0 : i32
    return %c0_i32, %c0_i32_0 : i32, i32
  }
}

</mosaic_0001>

<bundles_post_ra>
// kernel: tpu_custom_call.1
= control target key start
LH: loop header
LB: loop body
LE: loop exit
PB: predicated region body
PF: predicated region fallthrough
CT: control target
= control target key end

     0   :  { %s1815_s0 = inlined_call_operand.vmem [shape: f32[2,16,16], index: 0, kind: input, shape index: {}]   ;;  %s1816_s1 = inlined_call_operand.hbm [shape: f32[2,1,16], index: 1, kind: input, shape index: {}]   ;;  %s1817_s2 = inlined_call_operand.vmem [shape: f32[2,16,1], index: 2, kind: input, shape index: {}]   ;;  %s1818_s3 = inlined_call_operand.hbm [shape: f32[2,1,8], index: 3, kind: input, shape index: {}]   ;;  %s1819_s4 = inlined_call_operand.hbm [shape: f32[2,1,8], index: 4, kind: input, shape index: {}]   ;;  %s1820_s5 = inlined_call_operand.hbm [shape: f32[2,1,8], index: 5, kind: input, shape index: {}]   ;;  %s1821_s6 = inlined_call_operand.hbm [shape: f32[2,1,8], index: 6, kind: input, shape index: {}]   ;;  %s1822_s7 = inlined_call_operand.hbm [shape: f32[2,4,8], index: 7, kind: input, shape index: {}]   ;;  %s1823_s8 = inlined_call_operand.vmem [shape: f32[2,8,128], index: 8, kind: input, shape index: {}]   ;;  %s1824_s9 = inlined_call_operand.hbm [shape: f32[2,8,128], index: 9, kind: input, shape index: {}]   ;;  %s1825_s10 = inlined_call_operand.hbm [shape: f32[1,4], index: 10, kind: output, shape index: {}]  }
   0x1   :  { %1831 = sst [smem:[#allocation27_spill]] %s1815_s0 }
   0x2   :  { %1832 = sst [smem:[#allocation28_spill]] %s1817_s2 }
   0x3   :  { %1833 = sst [smem:[#allocation29_spill]] %s1818_s3 }
   0x4   :  { %1834 = sst [smem:[#allocation30_spill]] %s1820_s5 }
   0x5   :  { %1835 = sst [smem:[#allocation31_spill]] %s1823_s8 }
   0x6   :  { %1836 = sst [smem:[#allocation32_spill]] %s1825_s10 }
   0x7   :  { %15 = vsyncpa [#allocation6], 0 }
   0x8   :  { %17 = vsyncpa [#allocation6 + $0x1], 0 }
   0x9   :  { %18 = vsyncpa [#allocation9], 0 }
   0xa   :  { %20 = vsyncpa [#allocation9 + $0x1], 0 }
   0xb   :  { %21 = vsyncpa [#allocation12], 0 }
   0xc   :  { %23 = vsyncpa [#allocation12 + $0x1], 0 }
   0xd   :  { %24 = vsyncpa [#allocation15], 0 }
   0xe   :  { %26 = vsyncpa [#allocation15 + $0x1], 0 }
   0xf   :  { %27 = vsyncpa [#allocation7], 0  ;;  %s1561_s13 = smov 0   ;;  %s1563_s14 = smov 0  }
  0x10   :  { %s1565_s15 = smov 0   ;;  %s1567_s16 = smov 0  }
  0x11   :  { %s1569_s17 = smov 0   ;;  %s1571_s18 = smov 0  }
  0x12 LB: > { %1837 = sst [smem:[#allocation23_spill]] %s1481_s15  ;;  %s1590_s19 = sadd.s32 4294967295, %s1493_s18   ;;  %s1493_s18 = sphi %s1571_s18, %s33_s18   ;;  %s1489_s17 = sphi %s1569_s17, %s1862_s17   ;;  %s1485_s16 = sphi %s1567_s16, %s1861_s16   ;;  %s1481_s15 = sphi %s1565_s15, %s1857_s15   ;;  %s1477_s14 = sphi %s1563_s14, %s1860_s14   ;;  %s1473_s13 = sphi %s1561_s13, %s1859_s13  }
  0x13   : > { %1838 = sst [smem:[#allocation24_spill]] %s1493_s18  ;;  %s45_s20 = sadd.s32 1, %s1489_s17 }
  0x14   : > { %p47_p0 = scmp.ge.s32.totalorder %s45_s20, 2  ;;  %s80_s21 = sadd.s32 1, %s1481_s15 }
  0x15   : > { %p87_p1 = scmp.ne.s32.totalorder %s1481_s15, %s1477_s14  ;;  %p88_p2 = scmp.eq.s32.totalorder %s1493_s18, 0 }
  0x16   : > { %s1864_s20 = smov (%p47_p0, %s45_s20), 0  ;;  %p93_p4 = scmp.ne.s32.totalorder %s1477_s14, %s1473_s13 }
  0x17   : > { %1839 = sst [smem:[#allocation25_spill]] %s1864_s20  ;;  %p89_p3 = por %p88_p2, %p87_p1 }
  0x18   : > { %s77_s22 = ssub.s32 %s1489_s17, %s1864_s20  ;;  %p94_p5 = scmp.eq.s32.totalorder %s1590_s19, 0 }
  0x19   : > { %p78_p6 = scmp.eq.s32.totalorder %s77_s22, 0  ;;  %p1165_p8 = scmp.lt.s32.totalorder %s1493_s18, 2 }
  0x1a   : > { %p1603_p7 = por %p94_p5, %p93_p4  ;;  %s1612_s25 = sand.u32 1, %s1481_s15  }
  0x1b   : > { %s1609_s24 = scalar_select %p78_p6, %s1481_s15, %s80_s21  }
  0x1c   : > { %s1615_s26 = sshll.u32 %s1489_s17, 4  ;;  %p1617_p9 = pnand %p1165_p8, %p89_p3 }
  0x1d   : > { %1841 = sst [smem:[#allocation26_spill]] %s1609_s24  ;;  %s1622_s28 = sand.u32 1, %s1493_s18  }
  0x1e   : > { %s1843_s3 = sld [smem:[#allocation29_spill]]  ;;  %s398_s12 = scalar_lea.vmem [#allocation8], %s1612_s25 }
  0x1f   : > { %s405_s13 = sshll.u32 %s398_s12, 4  ;;  %p1100_p10 = scmp.ge.s32.totalorder %s1493_s18, 1  ;;  %s406_s13 = int_to_ptr.vmem [resolvable:$true] %s405_s13 }
  0x20   : > { %p508_p11 = scmp.lt.s32.totalorder %s1493_s18, 3  ;;  %s1828_s21 = scalar_lea.sflag [#allocation9], %s1622_s28 }
  0x21   : > { %p1634_p12 = pneg %p1617_p9  ;;  %s1234_s20 = scalar_lea.vmem %s406_s13, 16 }
  0x22   : > { %p1235_p13 = scmp.ne.s32.totalorder %s406_s13, %s1234_s20  ;;  %s1495_s29 = smov [#allocation8]  }
  0x23   : > { %s1239_s30 = sshll.u32 %s1495_s29, 4  ;;  %s1240_s30 = int_to_ptr.vmem [resolvable:$false] %s1239_s30 }
  0x24   : > { %s403_s11 = scalar_lea.hbm %s1843_s3, %s1615_s26  ;;  %p1237_p0 = pnand %p1235_p13, %p1634_p12 }
  0x25   : > { %s1241_s3 = scalar_lea.vmem %s1240_s30, 32  ;;  %p1242_p2 = scmp.lt.s32.totalorder %s406_s13, %s1240_s30 }
  0x26   : > { %p1238_p1 = pneg %p1237_p0  ;;  %p1243_p3 = scmp.lt.s32.totalorder %s1241_s3, %s1234_s20 }
  0x28   : > { %p1244_p4 = por %p1243_p3, %p1242_p2 }
  0x2a   : > { %p1245_p5 = pnand %p1244_p4, %p1238_p1 }
  0x2c   : > { %1248 = shalt.err (!%p1245_p5)
}
  0x2d   : > { %1149 = dma.hbm_to_vmem [thread:$0]  (!%p1617_p9), %s403_s11, 16, %s406_s13, %s1828_s21  }
  0x2e   : > { %p1648_p6 = pnand %p1100_p10, %p508_p11  ;;  %s1846_s5 = sld [smem:[#allocation30_spill]] }
  0x2f   : > { %s432_s30 = scalar_lea.vmem [#allocation11], %s1612_s25  ;;  %s1096_s15 = sshll.u32 %s1612_s25, 2 }
  0x30   : > { %s439_s24 = sshll.u32 %s432_s30, 4  ;;  %s1830_s10 = scalar_lea.sflag [#allocation12], %s1622_s28  ;;  %s440_s24 = int_to_ptr.vmem [resolvable:$true] %s439_s24 }
  0x31   : > { %s1262_s8 = scalar_lea.vmem %s440_s24, 16  ;;  %s1496_s11 = smov [#allocation11]  }
  0x32   : > { %p1263_p8 = scmp.ne.s32.totalorder %s440_s24, %s1262_s8  ;;  %s1267_s13 = sshll.u32 %s1496_s11, 4  ;;  %s1268_s13 = int_to_ptr.vmem [resolvable:$false] %s1267_s13 }
  0x33   : > { %s1269_s21 = scalar_lea.vmem %s1268_s13, 32  ;;  %p1270_p10 = scmp.lt.s32.totalorder %s440_s24, %s1268_s13 }
  0x34   : > { %s437_s29 = scalar_lea.hbm %s1846_s5, %s1615_s26  ;;  %p1265_p13 = pnand %p1263_p8, %p1634_p12 }
  0x35   : > { %p1271_p11 = scmp.lt.s32.totalorder %s1269_s21, %s1262_s8 }
  0x36   : > { %p1266_p0 = pneg %p1265_p13 }
  0x37   : > { %p1272_p1 = por %p1271_p11, %p1270_p10 }
  0x39   : > { %p1273_p2 = pnand %p1272_p1, %p1266_p0 }
  0x3b   : > { %1276 = shalt.err (!%p1273_p2)
}
  0x3c   : > { %1155 = dma.hbm_to_vmem [thread:$0]  (!%p1617_p9), %s437_s29, 16, %s440_s24, %s1830_s10  }
  0x3d   : > { %s1097_s3 = sshll.u32 %s1489_s17, 6  ;;  %s467_s5 = scalar_lea.vmem [#allocation14], %s1096_s15 }
  0x3e   : > { %s472_s11 = scalar_lea.hbm %s1822_s7, %s1097_s3  ;;  %s474_s18 = sshll.u32 %s467_s5, 4  ;;  %s475_s18 = int_to_ptr.vmem [resolvable:$true] %s474_s18 }
  0x3f   : > { %s464_s8 = scalar_lea.sflag [#allocation15], %s1622_s28  ;;  %s1290_s21 = scalar_lea.vmem %s475_s18, 64 }
  0x40   : > { %p1291_p3 = scmp.ne.s32.totalorder %s475_s18, %s1290_s21  ;;  %s1497_s13 = smov [#allocation14]  }
  0x41   : > { %s1295_s2 = sshll.u32 %s1497_s13, 4  ;;  %s1296_s2 = int_to_ptr.vmem [resolvable:$false] %s1295_s2 }
  0x42   : > { %p1293_p4 = pnand %p1291_p3, %p1634_p12  ;;  %s1297_s0 = scalar_lea.vmem %s1296_s2, 128 }
  0x43   : > { %p1298_p8 = scmp.lt.s32.totalorder %s475_s18, %s1296_s2  ;;  %p1299_p13 = scmp.lt.s32.totalorder %s1297_s0, %s1290_s21 }
  0x44   : > { %p1294_p5 = pneg %p1293_p4 }
  0x45   : > { %p1300_p0 = por %p1299_p13, %p1298_p8 }
  0x47   : > { %p1301_p10 = pnand %p1300_p0, %p1294_p5 }
  0x49   : > { %1304 = shalt.err (!%p1301_p10)
}
  0x4a   : > { %1161 = dma.hbm_to_vmem [thread:$0]  (!%p1617_p9), %s472_s11, 64, %s475_s18, %s464_s8  }
  0x4b   : > { %s373_s24 = scalar_lea.hbm %s1816_s1, %s1615_s26  ;;  %s368_s29 = scalar_lea.vmem [#allocation5], %s1612_s25 }
  0x4c   : > { %s375_s2 = sshll.u32 %s368_s29, 4  ;;  %s420_s20 = scalar_lea.hbm %s1819_s4, %s1615_s26  ;;  %s376_s2 = int_to_ptr.vmem [resolvable:$true] %s375_s2 }
  0x4d   : > { %s366_s30 = scalar_lea.sflag [#allocation6], %s1612_s25  ;;  %s1318_s21 = scalar_lea.vmem %s376_s2, 16 }
  0x4e   : > { %p1319_p11 = scmp.ne.s32.totalorder %s376_s2, %s1318_s21  ;;  %s1498_s13 = smov [#allocation5]  }
  0x4f   : > { %s1323_s10 = sshll.u32 %s1498_s13, 4  ;;  %s1324_s10 = int_to_ptr.vmem [resolvable:$false] %s1323_s10 }
  0x50   : > { %p1321_p1 = pnand %p1319_p11, %p1634_p12  ;;  %s1325_s18 = scalar_lea.vmem %s1324_s10, 32 }
  0x51   : > { %p1326_p3 = scmp.lt.s32.totalorder %s376_s2, %s1324_s10  ;;  %p1327_p4 = scmp.lt.s32.totalorder %s1325_s18, %s1318_s21 }
  0x52   : > { %p1322_p2 = pneg %p1321_p1 }
  0x53   : > { %p1328_p5 = por %p1327_p4, %p1326_p3 }
  0x55   : > { %p1329_p8 = pnand %p1328_p5, %p1322_p2 }
  0x57   : > { %1332 = shalt.err (!%p1329_p8)
}
  0x58   : > { %1146 = dma.hbm_to_vmem [thread:$0]  (!%p1617_p9), %s373_s24, 16, %s376_s2, %s366_s30  }
  0x59   : > { %s415_s11 = scalar_lea.vmem [#allocation10], %s1612_s25  ;;  %s454_s0 = scalar_lea.hbm %s1821_s6, %s1615_s26 }
  0x5a   : > { %s422_s5 = sshll.u32 %s415_s11, 4  ;;  %s1499_s10 = smov [#allocation10]   ;;  %s423_s5 = int_to_ptr.vmem [resolvable:$true] %s422_s5 }
  0x5b   : > { %s1346_s3 = scalar_lea.vmem %s423_s5, 16  ;;  %s1351_s21 = sshll.u32 %s1499_s10, 4  ;;  %s1352_s21 = int_to_ptr.vmem [resolvable:$false] %s1351_s21 }
  0x5c   : > { %p1347_p13 = scmp.ne.s32.totalorder %s423_s5, %s1346_s3  ;;  %s1353_s13 = scalar_lea.vmem %s1352_s21, 32 }
  0x5d   : > { %p1354_p11 = scmp.lt.s32.totalorder %s423_s5, %s1352_s21  ;;  %p1355_p1 = scmp.lt.s32.totalorder %s1353_s13, %s1346_s3 }
  0x5e   : > { %p1349_p0 = pnand %p1347_p13, %p1634_p12 }
  0x5f   : > { %p1356_p2 = por %p1355_p1, %p1354_p11 }
  0x60   : > { %p1350_p10 = pneg %p1349_p0 }
  0x62   : > { %p1357_p3 = pnand %p1356_p2, %p1350_p10 }
  0x64   : > { %1360 = shalt.err (!%p1357_p3)
}
  0x65   : > { %s1847_s24 = scalar_lea.sflag [#allocation9], %s1622_s28  ;;  %s449_s18 = scalar_lea.vmem [#allocation13], %s1612_s25 }
  0x66   : > { %1152 = dma.hbm_to_vmem [thread:$0]  (!%p1617_p9), %s420_s20, 16, %s423_s5, %s1847_s24  }
  0x67   : > { %s456_s11 = sshll.u32 %s449_s18, 4  ;;  %s1098_s15 = sshll.u32 %s1612_s25, 3  ;;  %s457_s11 = int_to_ptr.vmem [resolvable:$true] %s456_s11 }
  0x68   : > { %s1374_s29 = scalar_lea.vmem %s457_s11, 16  ;;  %s1500_s3 = smov [#allocation13]  }
  0x69   : > { %p1375_p4 = scmp.ne.s32.totalorder %s457_s11, %s1374_s29  ;;  %s1379_s10 = sshll.u32 %s1500_s3, 4  ;;  %s1380_s10 = int_to_ptr.vmem [resolvable:$false] %s1379_s10 }
  0x6a   : > { %s1381_s21 = scalar_lea.vmem %s1380_s10, 32  ;;  %p1382_p13 = scmp.lt.s32.totalorder %s457_s11, %s1380_s10 }
  0x6b   : > { %p1377_p5 = pnand %p1375_p4, %p1634_p12  ;;  %p1383_p0 = scmp.lt.s32.totalorder %s1381_s21, %s1374_s29 }
  0x6d   : > { %p1378_p8 = pneg %p1377_p5  ;;  %p1384_p10 = por %p1383_p0, %p1382_p13 }
  0x6f   : > { %p1385_p11 = pnand %p1384_p10, %p1378_p8 }
  0x71   : > { %1388 = shalt.err (!%p1385_p11)
}
  0x72   : > { %s1848_s20 = scalar_lea.sflag [#allocation12], %s1622_s28  ;;  %s1099_s13 = sshll.u32 %s1489_s17, 7 }
  0x73   : > { %1158 = dma.hbm_to_vmem [thread:$0]  (!%p1617_p9), %s454_s0, 16, %s457_s11, %s1848_s20  }
  0x74   : > { %s495_s24 = scalar_lea.vmem [#allocation16], %s1098_s15  ;;  %s501_s29 = scalar_lea.hbm %s1824_s9, %s1099_s13 }
  0x75   : > { %s503_s2 = sshll.u32 %s495_s24, 4  ;;  %s1501_s10 = smov [#allocation16]   ;;  %s504_s2 = int_to_ptr.vmem [resolvable:$true] %s503_s2 }
  0x76   : > { %s1402_s3 = scalar_lea.vmem %s504_s2, 128  ;;  %s1407_s21 = sshll.u32 %s1501_s10, 4  ;;  %s1408_s21 = int_to_ptr.vmem [resolvable:$false] %s1407_s21 }
  0x77   : > { %p1403_p1 = scmp.ne.s32.totalorder %s504_s2, %s1402_s3  ;;  %s1409_s26 = scalar_lea.vmem %s1408_s21, 256 }
  0x78   : > { %p1410_p4 = scmp.lt.s32.totalorder %s504_s2, %s1408_s21  ;;  %p1411_p5 = scmp.lt.s32.totalorder %s1409_s26, %s1402_s3 }
  0x79   : > { %p1405_p2 = pnand %p1403_p1, %p1634_p12 }
  0x7a   : > { %p1412_p8 = por %p1411_p5, %p1410_p4 }
  0x7b   : > { %p1406_p3 = pneg %p1405_p2 }
  0x7d   : > { %p1413_p13 = pnand %p1412_p8, %p1406_p3 }
  0x7f   : > { %1416 = shalt.err (!%p1413_p13)
}
  0x80   : > { %1164 = dma.hbm_to_vmem [thread:$0]  (!%p1617_p9), %s501_s29, 128, %s504_s2, %s464_s8  }
  0x81   : > { %512 = sbr.rel (%p1648_p6) target bundleno = 541 (0x21d), region = 60  ;;  %s1732_s22 = sand.u32 (!%p1648_p6), 1, %s1477_s14  }
  0x82   : > { %s515_s0 = scalar_lea.sflag (!%p1648_p6), [#allocation6], %s1732_s22 }
  0x86   : > { %1452 = dma.done.wait (%p1603_p7), %s515_s0, 16  }
  0x87   : > { %1454 = vsyncadd (%p1603_p7), %s515_s0, 4294967280  ;;  %s522_s27 = sand.u32 1, %s1590_s19   ;;  %s525_s12 = scalar_lea.vmem [#allocation8], %s1732_s22 }
  0x88   : > { %s523_s28 = scalar_lea.sflag [#allocation9], %s522_s27 }
  0x89   : > { %1456 = dma.done.wait (%p1603_p7), %s523_s28, 32  }
  0x8a   : > { %1458 = vsyncadd (%p1603_p7), %s523_s28, 4294967264  ;;  %s533_s8 = scalar_lea.vmem [#allocation10], %s1732_s22  ;;  %s539_s15 = scalar_lea.sflag [#allocation12], %s522_s27 }
  0x8b   : > { %s541_s20 = scalar_lea.vmem [#allocation11], %s1732_s22 }
  0x8c   : > { %1460 = dma.done.wait (%p1603_p7), %s539_s15, 32  }
  0x8d   : > { %1462 = vsyncadd (%p1603_p7), %s539_s15, 4294967264  ;;  %s1101_s25 = sshll.u32 %s1732_s22, 2  ;;  %s555_s13 = scalar_lea.sflag [#allocation15], %s522_s27 }
  0x8e   : > { %s1754_s24 = scalar_lea.vmem [#allocation14], %s1101_s25 }
  0x8f   : > { %1464 = dma.done.wait (%p1603_p7), %s555_s13, 192  }
  0x90   : > { %1466 = vsyncadd (%p1603_p7), %s555_s13, 4294967104  ;;  %s1102_s2 = sshll.u32 %s1732_s22, 3  ;;  %p650_p9 = scmp.lt.s32.totalorder %s1485_s16, 1 }
  0x91   : > { %p676_p12 = scmp.eq.s32.totalorder %s1485_s16, 0  ;;  %p680_p6 = scmp.eq.s32.totalorder %s1485_s16, 1 }
  0x92   : > { %s651_s30 = scalar_select %p650_p9, %s1485_s16, 1  ;;  %vm685_vm0 = vcmask (%p676_p12), 122880   ;;  %vm687_vm1 = vcmask (%p676_p12), 57344   ;;  %v1502_v0 = vmov (%p676_p12), 0.0  }
  0x93   : > { %s1849_s21 = sld [smem:[#allocation27_spill]]  ;;  %s567_s5 = scalar_lea.vmem [#allocation16], %s1102_s2  ;;  %686 = vst.msk [vmem:[#allocation2] sm:$0x1] (%p676_p12), %vm685_vm0, %v1502_v0  ;;  %689 = vst [vmem:[#allocation4] sm:$0x1] (%p676_p12), %v1502_v0 }
  0x94   : > { %s1115_s18 = sshll.u32 %s651_s30, 4  ;;  %s1107_s29 = sshll.u32 %s651_s30, 3  ;;  %688 = vst.msk [vmem:[#allocation3] sm:$0x1] (%p676_p12), %vm687_vm1, %v1502_v0 }
  0x95   : > { %s1850_s27 = sld [smem:[#allocation28_spill]] }
  0x96   : > { %s1851_s13 = sld [smem:[#allocation31_spill]] }
  0x98   : > { %684 = sbr.rel (!%p676_p12) target bundleno = 157 (0x9d), region = 92 }
  0x99   : > { %s1768_s26 = scalar_lea.vmem %s1849_s21, %s1115_s18 }
  0x9b   : > { %s667_s28 = scalar_lea.vmem %s1850_s27, %s1115_s18 }
  0x9c   : > { %s675_s11 = scalar_lea.vmem %s1851_s13, %s1107_s29 }
  0x9d PF: > { %v709_v1 = vld [vmem:[%s667_s28] sm:$0xff]  ;;  %v1503_v2 = vmov 0   ;;  %v759_v3 = vlaneseq  ;;  %v1504_v4 = vmov 1966171168   ;;  %v710_v6 = vld [vmem:[%s667_s28 + $0x8] sm:$0xff]  ;;  %vm797_vm2 = vcmask 57344  }
  0x9e   : > { %1220 = vset.pattern.permute.xlu0 %v1503_v2  ;;  %v757_v5 = vunpack.c.l.s4 %v1504_v4  ;;  %v694_v9 = vld [vmem:[%s675_s11] sm:$0xff]  ;;  %v751_v11 = vld [vmem:[%s1754_s24] sm:$0xf]  ;;  %s1852_s11 = scalar_lea.vmem [#allocation13], %s1732_s22  ;;  %vm735_vm3 = vcmask 130048   ;;  %vm746_vm4 = vcmask 122880  }
  0x9f   : > { %714 = vperm.xlu0 %1220, %v709_v1   ;;  %v760_v7 = vshrl.u32 %v759_v3, 7  ;;  %v695_v10 = vld [vmem:[%s567_s5] sm:$0xff]  ;;  %v708_v50 = vld [vmem:[%s1768_s26 + $0x8] sm:$0xff]  ;;  %vm832_vm5 = vcmask (%p680_p6), 1040384  }
  0xa0   : > { %v758_v8 = vunpack.c.0.s8 %v757_v5  ;;  %v696_v13 = vsub.f32 %v694_v9, %v695_v10  ;;  %v752_v19 = vld [vmem:[%s525_s12] sm:$0x1]  ;;  %v697_v41 = vld [vmem:[#allocation4] sm:$0x1]  ;;  %v788_v42 = vld [vmem:[#allocation3] sm:$0x1] }
  0xa1   : > { %v754_v20 = vld [vmem:[%s533_s8] sm:$0x1]  ;;  %v753_v23 = vsub.f32 %v752_v19, %v751_v11  ;;  %s1853_s12 = scalar_lea.vmem [#allocation5], %s1732_s22 }
  0xa2   : > { %v761_v12 = vsub.s32 %v758_v8, %v760_v7  ;;  %v698_v15 = vmul.f32 %v696_v13, %v696_v13  ;;  %v780_v26 = vld [vmem:[%s541_s20] sm:$0x1] }
  0xa3   : > { %719 = vperm.xlu0 %1220, %v710_v6   ;;  %v789_v30 = vmul.f32 %v753_v23, %v753_v23  ;;  %v784_v31 = vld [vmem:[%s1852_s11] sm:$0x1] }
  0xa4   : > { %v762_v14 = vrot.slane %v751_v11, %v761_v12  ;;  %v699_v17 = vrot.slane %v698_v15, 4  ;;  %v707_v46 = vld [vmem:[%s1768_s26] sm:$0xff] }
  0xa5   : > { %v1110_v47 = vld [vmem:[%s1853_s12] ss:$0 sm:$0xff] }
  0xa6   : > { %v763_v16 = vcombine.high %v762_v14, %v762_v14  ;;  %v770_v18 = vrot.slane %v762_v14, %v761_v12  ;;  %v700_v22 = vadd.f32 %v699_v17, %v698_v15  ;;  %v732_v1 = vld [vmem:[#allocation2] sm:$0x1] }
  0xa8   : > { %v777_v21 = vrot.slane %v763_v16, %v761_v12  ;;  %v781_v24 = vcombine.high %v770_v18, %v770_v18  ;;  %v701_v27 = vrot.slane %v700_v22, 2 }
  0xaa   : > { %v779_v25 = vsub.f32 %v754_v20, %v777_v21  ;;  %v783_v28 = vsub.f32 %v780_v26, %v781_v24  ;;  %v785_v29 = vcombine.high %v777_v21, %v777_v21  ;;  %v702_v33 = vadd.f32 %v701_v27, %v700_v22 }
  0xac   : > { %v790_v32 = vmul.f32 %v779_v25, %v779_v25  ;;  %v787_v34 = vsub.f32 %v784_v31, %v785_v29  ;;  %v792_v35 = vmul.f32 %v783_v28, %v783_v28  ;;  %v703_v37 = vrot.slane %v702_v33, 1 }
  0xae   : > { %v791_v36 = vadd.f32 %v790_v32, %v789_v30  ;;  %v794_v38 = vmul.f32 %v787_v34, %v787_v34  ;;  %v704_v40 = vadd.f32 %v703_v37, %v702_v33 }
  0xb0   : > { %v793_v39 = vadd.f32 %v792_v35, %v791_v36  ;;  %v705_v44 = vadd.f32 %v704_v40, %v697_v41 }
  0xb2   : > { %v795_v43 = vadd.f32 %v794_v38, %v793_v39  ;;  %706 = vst [vmem:[#allocation4] sm:$0x1] %v705_v44 }
  0xb4   : > { %v796_v45 = vadd.f32 %v795_v43, %v788_v42 }
  0xb6   : > { %798 = vst.msk [vmem:[#allocation3] sm:$0x1] %vm797_vm2, %v796_v45 }
  0xb9   : > { %v831_v4 = vld [vmem:[#allocation4] sm:$0x1] (%p680_p6) }
  0xba   : > { %v833_v6 = vsel (%p680_p6), %vm832_vm5, %v831_v4, 0.0 }
  0xbb   : > { %834 = vadd.xlane.f32.xlu1 (%p680_p6), %v833_v6 }
  0xbd   : > { %v816_v8 = vld [vmem:[#allocation3] sm:$0x1] (%p680_p6) }
  0xbe   : > { %v818_v9 = vsel (%p680_p6), %vm797_vm2, %v816_v8, 0.0 }
 0x11a   : > { %v715_v48 = vpop.permute.xlu0 %714 }
 0x11b   : > { %v722_v49 = vsub.f32 %v707_v46, %v715_v48 }
 0x11d   : > { %v730_v51 = vsub.f32 %v722_v49, %v1110_v47 }
 0x11e   : > { %v720_v52 = vpop.permute.xlu0 %719 }
 0x11f   : > { %v723_v53 = vsub.f32 %v708_v50, %v720_v52  ;;  %v733_v54 = vmul.f32 %v730_v51, %v730_v51 }
 0x121   : > { %v731_v55 = vsub.f32 %v723_v53, %v1110_v47  ;;  %v736_v57 = vsel %vm735_vm3, %v733_v54, 0.0 }
 0x123   : > { %v734_v56 = vmul.f32 %v731_v55, %v731_v55 }
 0x125   : > { %v737_v58 = vsel %vm735_vm3, %v734_v56, 0.0 }
 0x126   : > { %v738_v59 = vadd.f32 %v737_v58, %v736_v57 }
 0x128   : > { %v739_v60 = vrot.slane %v738_v59, 4 }
 0x12a   : > { %v740_v61 = vadd.f32 %v739_v60, %v738_v59 }
 0x12c   : > { %v741_v62 = vrot.slane %v740_v61, 2 }
 0x12e   : > { %v742_v63 = vadd.f32 %v741_v62, %v740_v61 }
 0x130   : > { %v743_v0 = vrot.slane %v742_v63, 1 }
 0x132   : > { %v744_v2 = vadd.f32 %v743_v0, %v742_v63  ;;  %800 = sbr.rel (!%p680_p6) target bundleno = 530 (0x212), region = 104 }
 0x134   : > { %v745_v3 = vadd.f32 %v744_v2, %v732_v1 }
 0x136   : > { %747 = vst.msk [vmem:[#allocation2] sm:$0x1] %vm746_vm4, %v745_v3 }
 0x13d   : > { %v801_v5 = vld [vmem:[#allocation2] sm:$0x1] }
 0x13e   : > { %v803_v7 = vsel %vm746_vm4, %v801_v5, 0.0 }
 0x13f   : > { %804 = vadd.xlane.f32.xlu0 %v803_v7 }
 0x143   : > { %819 = vadd.xlane.f32.xlu0 %v818_v9 }
 0x144   : > { %v835_v10 = vpop.xlane.xlu1 %834 }
 0x145   : > { %v836_v12 = vrot.slane %v835_v10, 4 }
 0x147   : > { %v837_v14 = vadd.f32 %v836_v12, %v835_v10 }
 0x149   : > { %v838_v17 = vrot.slane %v837_v14, 2 }
 0x14b   : > { %v839_v22 = vadd.f32 %v838_v17, %v837_v14 }
 0x14d   : > { %v840_v27 = vrot.slane %v839_v22, 1 }
 0x14f   : > { %v841_v30 = vadd.f32 %v840_v27, %v839_v22 }
 0x1c8   : > { %v805_v11 = vpop.xlane.xlu0 %804 }
 0x1c9   : > { %v806_v13 = vrot.slane %v805_v11, 4 }
 0x1cb   : > { %v807_v15 = vadd.f32 %v806_v13, %v805_v11 }
 0x1cc   : > { %v820_v16 = vpop.xlane.xlu0 %819 }
 0x1cd   : > { %v808_v18 = vrot.slane %v807_v15, 2  ;;  %v821_v19 = vrot.slane %v820_v16, 4 }
 0x1cf   : > { %v822_v20 = vadd.f32 %v821_v19, %v820_v16  ;;  %v809_v21 = vadd.f32 %v808_v18, %v807_v15 }
 0x1d1   : > { %v823_v23 = vrot.slane %v822_v20, 2  ;;  %v810_v24 = vrot.slane %v809_v21, 1 }
 0x1d3   : > { %v824_v25 = vadd.f32 %v823_v23, %v822_v20  ;;  %v811_v26 = vadd.f32 %v810_v24, %v809_v21 }
 0x1d5   : > { %1119 = vpush %v811_v26  ;;  %v825_v28 = vrot.slane %v824_v25, 1 }
 0x1d7   : > { %v826_v29 = vadd.f32 %v825_v28, %v824_v25 }
 0x1d9   : > { %1121 = vpush %v826_v29 }
 0x1da   : > { %1123 = vpush %v841_v30 }
 0x206   : > { %s1120_s16 = spop %1119 }
 0x207   : > { %s815_s22 = smul.f32 0.001953125, %s1120_s16 }
 0x209   : > { %852 = sst [smem:[#allocation17 + $0x1]] %s815_s22  ;;  %s846_s8 = smul.f32 0.0, %s815_s22 }
 0x20a   : > { %s1122_s20 = spop %1121 }
 0x20b   : > { %s830_s5 = smul.f32 0.015625, %s1122_s20  ;;  %s1124_s24 = spop %1123 }
 0x20c   : > { %s845_s2 = smul.f32 0.00048828125, %s1124_s24 }
 0x20d   : > { %s847_s30 = sadd.f32 %s846_s8, %s830_s5 }
 0x20e   : > { %854 = sst [smem:[#allocation17 + $0x2]] %s830_s5 }
 0x20f   : > { %s848_s18 = sadd.f32 %s847_s30, %s845_s2 }
 0x210   : > { %856 = sst [smem:[#allocation17 + $0x3]] %s845_s2 }
 0x211   : > { %850 = sst [smem:[#allocation17]] %s848_s18 }
 0x212 PF: > { %p1166_p7 = scmp.eq.s32.totalorder %s1590_s19, 1  ;;  %s1505_s29 = smov [#allocation17]  }
 0x213   : > { %s1854_s21 = sld [smem:[#allocation32_spill]] }
 0x219   : > { %1140 = dma.smem_to_hbm (%p1166_p7), %s1505_s29, 16, %s1854_s21, [#allocation7]  }
 0x21a   : > { %1468 = dma.done.wait (%p1166_p7), [#allocation7], 16  }
 0x21b   : > { %1470 = vsyncadd (%p1166_p7), [#allocation7], 4294967280 }
 0x21c   : > { %870 = sfence }
 0x21d PF: > { %s1855_s26 = sld [smem:[#allocation24_spill]]  ;;  %s1859_s13 = smov %s1477_s14 }
 0x21e   : > { %s1856_s0 = sld [smem:[#allocation23_spill]]  ;;  %s1861_s16 = smov %s1489_s17 }
 0x21f   : > { %s1857_s15 = sld [smem:[#allocation26_spill]] }
 0x220   : > { %s1858_s23 = sld [smem:[#allocation25_spill]] }
 0x223   : > { %s33_s18 = sadd.s32 1, %s1855_s26  }
 0x224   : > { %p30_p0 = scmp.ge.s32.totalorder %s33_s18, 4   ;;  %s1860_s14 = smov %s1856_s0 }
 0x226   : > { %s1862_s17 = smov %s1858_s23  ;;  %32 = sbr.rel (!%p30_p0) target bundleno = 18 (0x12), region = 198 }
 0x22b   :  { %876 = vsyncpa [#allocation6], 1 }
 0x22c   :  { %878 = vsyncpa [#allocation6 + $0x1], 1 }
 0x22d   :  { %879 = vsyncpa [#allocation9], 1 }
 0x22e   :  { %881 = vsyncpa [#allocation9 + $0x1], 1 }
 0x22f   :  { %882 = vsyncpa [#allocation12], 1 }
 0x230   :  { %884 = vsyncpa [#allocation12 + $0x1], 1 }
 0x231   :  { %885 = vsyncpa [#allocation15], 1 }
 0x232   :  { %887 = vsyncpa [#allocation15 + $0x1], 1 }
 0x233   :  { %888 = vsyncpa [#allocation7], 1 }
 0x234   :  { %890 = vsyncpa [#allocation7 + $0x1], 1 }

</bundles_post_ra>
